<compile_context>
chip_gen: v5e
topology: v5e:2x2
jax: 0.10.0
libtpu: 0.0.40
codegen_flags: <defaults>
</compile_context>

<pallas_src>
import functools

import jax
import jax.numpy as jnp
from jax.experimental import pallas as pl
from jax.experimental.pallas import tpu as pltpu


def linreg_kernel(x_ref, w_ref, b_ref, o_ref):
    # x_ref: (F, br, 128) f32 VMEM tile -- batch packed densely on (sublane, lane)
    # w_ref: (1, F) f32 SMEM, b_ref: (1, 1) f32 SMEM
    # o_ref: (br, 128) f32 VMEM tile   -- dense output slab
    F = x_ref.shape[0]
    y = jnp.full(o_ref.shape, b_ref[0, 0], dtype=jnp.float32)   # bias broadcast
    for f in range(F):                                          # static unroll (F == 2)
        y = y + w_ref[0, f] * x_ref[f]                          # VPU broadcast-FMA
    o_ref[...] = y.astype(o_ref.dtype)


def _round_up(x, m):
    return ((x + m - 1) // m) * m


@functools.partial(jax.jit, static_argnames=("vmem_budget_bytes",))
def linear_regression(x, w, b, vmem_budget_bytes=6 << 20):
    """y = x @ w.T + b with x:(N,F), w:(1,F), b:(1,1) -> (N,1)."""
    N, F = x.shape
    assert w.shape == (1, F) and b.shape == (1, 1)

    # --- dense (sublane x lane) repack, fused by XLA under jit --------------
    R = pl.cdiv(N, 128)          # number of 128-lane rows
    n128 = R * 128               # N rounded up to a full lane row (<=127 extra)
    x_t = x.T                    # (F, N)
    if n128 != N:
        x_t = jnp.pad(x_t, ((0, 0), (0, n128 - N)))
    x_d = x_t.reshape(F, R, 128)

    # --- tile sizing: big tiles, bounded double-buffered VMEM ---------------
    bytes_per_row = (F + 1) * 128 * 4 * 2        # x tile + out tile, 2-deep pipeline
    br = max(8, (vmem_budget_bytes // bytes_per_row) // 8 * 8)
    if R > 16:                                   # v7x: keep >=2 parallel grid steps
        br = min(br, _round_up(pl.cdiv(R, 2), 8))
    if br >= R:
        br = R                                   # single full-extent block
    grid = (pl.cdiv(R, br),)                     # no pad to a br multiple: partial last
                                                 # block -> OOB writes are discarded

    out = pl.pallas_call(
        linreg_kernel,
        out_shape=jax.ShapeDtypeStruct((R, 128), x.dtype),
        grid=grid,
        in_specs=[
            pl.BlockSpec((F, br, 128), lambda i: (0, i, 0)),          # x tile (VMEM)
            pl.BlockSpec(memory_space=pltpu.MemorySpace.SMEM),        # w scalars
            pl.BlockSpec(memory_space=pltpu.MemorySpace.SMEM),        # b scalar
        ],
        out_specs=pl.BlockSpec((br, 128), lambda i: (i, 0)),
        compiler_params=pltpu.CompilerParams(
            dimension_semantics=("parallel",)),                       # 2-TC shard on v7x
        cost_estimate=pl.CostEstimate(
            flops=2 * N * F,
            transcendentals=0,
            bytes_accessed=((F + 1) * n128 + F + 1) * 4),             # actual dense slabs
    )(x_d, w, b)

    # Back to the torch output layout (N, 1); view-like slice/reshape under jit.
    return out.reshape(n128)[:N].reshape(N, 1)


if __name__ == "__main__":
    key = jax.random.PRNGKey(0)
    kx, kw, kx2, kx3 = jax.random.split(key, 4)

    # Small shapes consistent with the module (in_features=2, out_features=1).
    N, F = 8, 2
    x = jax.random.normal(kx, (N, F), dtype=jnp.float32)
    w = jax.random.normal(kw, (1, F), dtype=jnp.float32)   # ~ randn_like(w0)
    b = jnp.zeros((1, 1), dtype=jnp.float32)               # zeros_like(b0)

    out = linear_regression(x, w, b)
    jax.block_until_ready(out)
    ref = x @ w.T + b
    assert out.shape == (N, 1)
    assert jnp.allclose(out, ref, atol=1e-5), (out, ref)

    # Non-multiple-of-128 batch: exercises the lane-row padding path.
    N2 = 300
    x2 = jax.random.normal(kx2, (N2, F), dtype=jnp.float32)
    out2 = linear_regression(x2, w, b)
    jax.block_until_ready(out2)
    assert out2.shape == (N2, 1)
    assert jnp.allclose(out2, x2 @ w.T + b, atol=1e-5)

    # Force a multi-step grid with a partial last block (OOB-discard path).
    N3 = 1400
    x3 = jax.random.normal(kx3, (N3, F), dtype=jnp.float32)
    out3 = linear_regression(x3, w, b, vmem_budget_bytes=24 * 1024)
    jax.block_until_ready(out3)
    assert out3.shape == (N3, 1)
    assert jnp.allclose(out3, x3 @ w.T + b, atol=1e-5)

    print("KERNEL_OK")
</pallas_src>

<mosaic_0001>
module attributes {stable_mosaic.version = 11 : i64} {
  func.func @linreg_kernel(%arg0: i32, %arg1: memref<2x1x128xf32, #tpu.memory_space<vmem>>, %arg2: memref<1x2xf32, #tpu.memory_space<smem>>, %arg3: memref<1x1xf32, #tpu.memory_space<smem>>, %arg4: memref<1x128xf32, #tpu.memory_space<vmem>>) attributes {dimension_semantics = [#tpu.dimension_semantics<parallel>], iteration_bounds = array<i64: 1>, scalar_prefetch = 0 : i64, scratch_operands = 0 : i64, tpu.core_type = #tpu.core_type<tc>, window_params = [{transform_indices = @transform_0, window_bounds = array<i64: 2, 1, 128>}, {transform_indices = @transform_1, window_bounds = array<i64: 1, 2>}, {transform_indices = @transform_2, window_bounds = array<i64: 1, 1>}, {transform_indices = @transform_3, window_bounds = array<i64: 1, 128>}]} {
    %c0 = arith.constant 0 : index
    %c0_0 = arith.constant 0 : index
    %0 = memref.load %arg3[%c0, %c0_0] : memref<1x1xf32, #tpu.memory_space<smem>>
    %1 = vector.broadcast %0 : f32 to vector<1x128xf32>
    %c0_1 = arith.constant 0 : index
    %c0_2 = arith.constant 0 : index
    %2 = memref.load %arg2[%c0_1, %c0_2] : memref<1x2xf32, #tpu.memory_space<smem>>
    %c0_3 = arith.constant 0 : index
    %c0_4 = arith.constant 0 : index
    %c0_5 = arith.constant 0 : index
    %3 = vector.load %arg1[%c0_3, %c0_4, %c0_5] : memref<2x1x128xf32, #tpu.memory_space<vmem>>, vector<1x1x128xf32>
    %4 = vector.shape_cast %3 : vector<1x1x128xf32> to vector<1x128xf32>
    %5 = vector.broadcast %2 : f32 to vector<1x128xf32>
    %6 = arith.mulf %5, %4 : vector<1x128xf32>
    %7 = arith.addf %1, %6 : vector<1x128xf32>
    %c0_6 = arith.constant 0 : index
    %c1 = arith.constant 1 : index
    %8 = memref.load %arg2[%c0_6, %c1] : memref<1x2xf32, #tpu.memory_space<smem>>
    %c1_7 = arith.constant 1 : index
    %c0_8 = arith.constant 0 : index
    %c0_9 = arith.constant 0 : index
    %9 = vector.load %arg1[%c1_7, %c0_8, %c0_9] : memref<2x1x128xf32, #tpu.memory_space<vmem>>, vector<1x1x128xf32>
    %10 = vector.shape_cast %9 : vector<1x1x128xf32> to vector<1x128xf32>
    %11 = vector.broadcast %8 : f32 to vector<1x128xf32>
    %12 = arith.mulf %11, %10 : vector<1x128xf32>
    %13 = arith.addf %7, %12 : vector<1x128xf32>
    %c0_10 = arith.constant 0 : index
    %c0_11 = arith.constant 0 : index
    %14 = vector.load %arg4[%c0_10, %c0_11] : memref<1x128xf32, #tpu.memory_space<vmem>>, vector<1x128xf32>
    tpu.vector_store %arg4[%c0_10, %c0_11], %13 {strides = array<i32>} : memref<1x128xf32, #tpu.memory_space<vmem>>, vector<1x128xf32>,
    return
  }
  func.func @transform_0(%arg0: i32) -> (i32, i32, i32) {
    %c0_i32 = arith.constant 0 : i32
    %c0_i32_0 = arith.constant 0 : i32
    %c0_i32_1 = arith.constant 0 : i32
    return %c0_i32, %arg0, %c0_i32_0 : i32, i32, i32
  }
  func.func @transform_1(%arg0: i32) -> (i32, i32) {
    %c0_i32 = arith.constant 0 : i32
    %c0_i32_0 = arith.constant 0 : i32
    %c0_i32_1 = arith.constant 0 : i32
    return %c0_i32, %c0_i32_0 : i32, i32
  }
  func.func @transform_2(%arg0: i32) -> (i32, i32) {
    %c0_i32 = arith.constant 0 : i32
    %c0_i32_0 = arith.constant 0 : i32
    %c0_i32_1 = arith.constant 0 : i32
    return %c0_i32, %c0_i32_0 : i32, i32
  }
  func.func @transform_3(%arg0: i32) -> (i32, i32) {
    %c0_i32 = arith.constant 0 : i32
    %c0_i32_0 = arith.constant 0 : i32
    return %arg0, %c0_i32 : i32, i32
  }
}

</mosaic_0001>

<bundles_post_ra>
// kernel: linear_regression.1
= control target key start
LH: loop header
LB: loop body
LE: loop exit
PB: predicated region body
PF: predicated region fallthrough
CT: control target
= control target key end

     0   :  { %9 = vsyncpa [#allocation4], 0  ;;  %s64_s15 = smov [#allocation3]   ;;  %s100_s0 = inlined_call_operand.vmem [shape: f32[2,1,128], index: 0, kind: input, shape index: {}]   ;;  %s101_s1 = inlined_call_operand.vmem [shape: f32[1,2], index: 1, kind: input, shape index: {}]   ;;  %s102_s2 = inlined_call_operand.<no memory space> [shape: f32[1,1], index: 2, kind: input, shape index: {}]   ;;  %s103_s3 = inlined_call_operand.vmem [shape: f32[1,128], index: 3, kind: output, shape index: {}]  }
   0x1   :  { %s17_s14 = sshll.u32 %s101_s1, 4  ;;  %s18_s14 = int_to_ptr.vmem [resolvable:$true] %s17_s14 }
   0x2   :  { %20 = dma.vmem_to_smem %s18_s14, 16, %s64_s15, [#allocation4]  }
   0x3   :  { %62 = dma.done.wait [#allocation4], 16  }
   0x4   :  { %63 = vsyncadd [#allocation4], 4294967280 }
   0x5   :  { %27 = sfence }
   0x6   :  { %s30_s16 = sld [smem:[#allocation3]]  ;;  %v31_v0 = vld [vmem:[%s100_s0] sm:$0x1]  ;;  %v48_v1 = vld [vmem:[%s100_s0 + $0x1] sm:$0x1]  ;;  %v29_v2 = vstv %s102_s2 }
   0x7   :  { %s47_s17 = sld [smem:[#allocation3 + $0x1]] }
   0xc   :  { %v32_v3 = vstv %s30_s16 }
   0xd   :  { %v33_v4 = vmul.f32 %v32_v3, %v31_v0  ;;  %v38_v5 = vstv %s47_s17 }
   0xe   :  { %v39_v6 = vmul.f32 %v48_v1, %v38_v5 }
   0xf   :  { %v34_v7 = vadd.f32 %v33_v4, %v29_v2 }
  0x11   :  { %v40_v8 = vadd.f32 %v39_v6, %v34_v7 }
  0x13   :  { %41 = vst [vmem:[%s103_s3] sm:$0x1] %v40_v8 }
  0x14   :  { %46 = vsyncpa [#allocation4], 1 }

</bundles_post_ra>
